<compile_context>
chip_gen: v7x
topology: tpu7x:2x2x1
jax: 0.10.0
libtpu: 0.0.40
codegen_flags: <defaults>
</compile_context>

<pallas_src>
import functools

import jax
import jax.numpy as jnp
from jax.experimental import pallas as pl
from jax.experimental.pallas import tpu as pltpu


# --------------------------------------------------------------------------
# Kernel
# --------------------------------------------------------------------------
def _vae_loss_kernel(rate_ref, x_hat_ref, norm_x_ref, mean_ref, log_var_ref,
                     loss_ref, acc_ref, *, B, D, Z, tb, td):
    i = pl.program_id(0)           # batch-block index  ("parallel")
    j = pl.program_id(1)           # feature-block index ("arbitrary", last)
    nd = pl.num_programs(1)

    rows_ragged = (B % tb) != 0
    cols_ragged = (D % td) != 0

    if rows_ragged:
        row_valid = (jax.lax.broadcasted_iota(jnp.int32, (tb, 1), 0)
                     + i * tb) < B                                  # (tb, 1)

    # --- KLD term: computed once per batch block (first feature step). ---
    @pl.when(j == 0)
    def _():
        mu = mean_ref[...].astype(jnp.float32)
        lv = log_var_ref[...].astype(jnp.float32)
        if rows_ragged:
            # Zero the garbage rows of the ragged last block so exp() stays
            # finite and the masked rows contribute exactly 0 (0 + 1 - 0 - 1).
            mu = jnp.where(row_valid, mu, 0.0)
            lv = jnp.where(row_valid, lv, 0.0)
        kld = mu * mu + jnp.exp(lv) - lv - 1.0                       # EUP exp
        kld_row = jnp.sum(kld, axis=-1, keepdims=True) * (1.0 / Z)   # (tb, 1)
        acc_ref[...] = rate_ref[0] * kld_row                         # rate: SMEM scalar

    # --- MSE term: accumulated over feature blocks. ---
    x = x_hat_ref[...].astype(jnp.float32)
    y = norm_x_ref[...].astype(jnp.float32)
    d = x - y
    d2 = d * d
    if rows_ragged:
        d2 = jnp.where(row_valid, d2, 0.0)
    if cols_ragged:
        col_valid = (jax.lax.broadcasted_iota(jnp.int32, (tb, td), 1)
                     + j * td) < D
        d2 = jnp.where(col_valid, d2, 0.0)
    acc_ref[...] += jnp.sum(d2, axis=-1, keepdims=True) * (1.0 / D)

    # --- Finalize: write per-row fused loss for this batch block. ---
    @pl.when(j == nd - 1)
    def _():
        loss_ref[...] = acc_ref[...].astype(loss_ref.dtype)


# --------------------------------------------------------------------------
# Tiling heuristics
# --------------------------------------------------------------------------
def _round_up(x, m):
    return ((x + m - 1) // m) * m


def _choose_tiles(B, D, Z, itemsize):
    """Pick (tb, td) so one grid step moves ~8 MiB across the two big inputs."""
    row_align = max(8, 32 // itemsize)        # 8 for f32, 16 for bf16, 32 for int8/fp8
    big_tile_bytes = 4 << 20                  # budget per (tb, td) tile of ONE big input

    # Feature tile: full D unless even a minimum-height block would blow the
    # per-tile budget (huge D) -> tile D in 128-lane multiples.
    if D <= 128 or D * row_align * itemsize <= big_tile_bytes:
        td = D
    else:
        td = (big_tile_bytes // (row_align * itemsize)) // 128 * 128
        td = int(max(128, min(td, (D // 128) * 128)))

    # Batch tile: fill the per-step DMA budget across all four inputs.
    per_row_bytes = (2 * td + 2 * Z) * itemsize
    tb = (2 * big_tile_bytes) // max(per_row_bytes, 1)
    tb = int(max(row_align, (tb // row_align) * row_align))

    if tb >= B:
        # Whole batch fits in one block: split into two aligned blocks when
        # possible so v7x's second TensorCore gets work; otherwise take it whole.
        half = _round_up((B + 1) // 2, row_align)
        tb = half if half < B else B
    return tb, td


# --------------------------------------------------------------------------
# Wrapper
# --------------------------------------------------------------------------
def _vae_loss_rows(x_hat, norm_x, mean, log_var, rate, *, tile_override=None):
    """Per-row fused loss: mse.mean(-1) + rate * kld.mean(-1), shape (B,)."""
    B, D = x_hat.shape
    _, Z = mean.shape
    itemsize = jnp.dtype(x_hat.dtype).itemsize

    if tile_override is None:
        tb, td = _choose_tiles(B, D, Z, itemsize)
    else:
        tb, td = tile_override
    n_b = pl.cdiv(B, tb)
    n_d = pl.cdiv(D, td)

    # Runtime scalar in SMEM -> no recompile when `rate` changes (KL annealing).
    rate_arr = jnp.asarray(rate, dtype=jnp.float32).reshape((1,))

    kernel = functools.partial(_vae_loss_kernel, B=B, D=D, Z=Z, tb=tb, td=td)

    step_bytes = tb * (2 * td + 2 * Z) * itemsize            # DMA per grid step
    vmem_limit = int(min(48 << 20, max(32 << 20, 2 * step_bytes + (8 << 20))))

    loss_rows = pl.pallas_call(
        kernel,
        out_shape=jax.ShapeDtypeStruct((B, 1), jnp.float32),
        grid=(n_b, n_d),
        in_specs=[
            pl.BlockSpec(memory_space=pltpu.MemorySpace.SMEM),       # rate (scalar)
            pl.BlockSpec((tb, td), lambda i, j: (i, j)),             # x_hat
            pl.BlockSpec((tb, td), lambda i, j: (i, j)),             # norm_x
            pl.BlockSpec((tb, Z), lambda i, j: (i, 0)),              # mean
            pl.BlockSpec((tb, Z), lambda i, j: (i, 0)),              # log_var
        ],
        out_specs=pl.BlockSpec((tb, 1), lambda i, j: (i, 0)),
        scratch_shapes=[pltpu.VMEM((tb, 1), jnp.float32)],
        compiler_params=pltpu.CompilerParams(
            dimension_semantics=("parallel", "arbitrary"),
            vmem_limit_bytes=vmem_limit),
    )(rate_arr, x_hat, norm_x, mean, log_var)

    return loss_rows[:, 0]


def vae_loss(x_hat, norm_x, mean, log_var, rate=0.5, reduction: bool = True,
             *, tile_override=None):
    loss_rows = _vae_loss_rows(x_hat, norm_x, mean, log_var, rate,
                               tile_override=tile_override)
    if reduction:
        # mean over all elements == mean over batch of row-means (equal-length
        # rows), so averaging the fused per-row losses is exact.
        return jnp.mean(loss_rows)
    return loss_rows


# --------------------------------------------------------------------------
# Pure-JAX reference (mirrors the PyTorch module)
# --------------------------------------------------------------------------
def _vae_loss_ref(x_hat, norm_x, mean, log_var, rate=0.5, reduction=True):
    x_hat = x_hat.astype(jnp.float32)
    norm_x = norm_x.astype(jnp.float32)
    mean = mean.astype(jnp.float32)
    log_var = log_var.astype(jnp.float32)
    kld = mean ** 2 + jnp.exp(log_var) - log_var - 1.0
    if reduction:
        mse = jnp.mean((x_hat - norm_x) ** 2)
        return mse + rate * jnp.mean(kld)
    mse = jnp.mean((x_hat - norm_x) ** 2, axis=-1)
    return mse + rate * jnp.mean(kld, axis=-1)


if __name__ == "__main__":
    key = jax.random.PRNGKey(0)
    k1, k2, k3, k4 = jax.random.split(key, 4)

    # Small shapes consistent with the module: (batch, feature), (batch, latent).
    B, D, Z = 8, 128, 32
    x_hat = jax.random.normal(k1, (B, D), dtype=jnp.float32)
    norm_x = jax.random.normal(k2, (B, D), dtype=jnp.float32)
    mean = jax.random.normal(k3, (B, Z), dtype=jnp.float32) * 0.5
    log_var = jax.random.normal(k4, (B, Z), dtype=jnp.float32) * 0.1

    # reduction=True (default): scalar loss
    loss = jax.block_until_ready(
        vae_loss(x_hat, norm_x, mean, log_var, rate=0.5, reduction=True))
    ref = _vae_loss_ref(x_hat, norm_x, mean, log_var, 0.5, True)
    assert jnp.allclose(loss, ref, rtol=1e-5, atol=1e-5), (loss, ref)

    # reduction=False: per-sample loss of shape (B,)
    loss_ns = jax.block_until_ready(
        vae_loss(x_hat, norm_x, mean, log_var, rate=0.5, reduction=False))
    ref_ns = _vae_loss_ref(x_hat, norm_x, mean, log_var, 0.5, False)
    assert loss_ns.shape == (B,)
    assert jnp.allclose(loss_ns, ref_ns, rtol=1e-5, atol=1e-5)

    # Batch not a multiple of the tile: exercises the pad-free ragged-row mask.
    B2 = 10
    x_hat2 = jax.random.normal(k1, (B2, D), dtype=jnp.float32)
    norm_x2 = jax.random.normal(k2, (B2, D), dtype=jnp.float32)
    mean2 = jax.random.normal(k3, (B2, Z), dtype=jnp.float32) * 0.5
    log_var2 = jax.random.normal(k4, (B2, Z), dtype=jnp.float32) * 0.1
    loss2 = jax.block_until_ready(
        vae_loss(x_hat2, norm_x2, mean2, log_var2, rate=0.5, reduction=True))
    ref2 = _vae_loss_ref(x_hat2, norm_x2, mean2, log_var2, 0.5, True)
    assert jnp.allclose(loss2, ref2, rtol=1e-5, atol=1e-5), (loss2, ref2)
    loss2_ns = jax.block_until_ready(
        vae_loss(x_hat2, norm_x2, mean2, log_var2, rate=0.5, reduction=False))
    ref2_ns = _vae_loss_ref(x_hat2, norm_x2, mean2, log_var2, 0.5, False)
    assert loss2_ns.shape == (B2,)
    assert jnp.allclose(loss2_ns, ref2_ns, rtol=1e-5, atol=1e-5)

    # bf16 inputs: no wrapper up-cast, in-kernel cast to f32, 16-row alignment.
    xb, nb = x_hat.astype(jnp.bfloat16), norm_x.astype(jnp.bfloat16)
    mb, lb = mean.astype(jnp.bfloat16), log_var.astype(jnp.bfloat16)
    loss_bf = jax.block_until_ready(
        vae_loss(xb, nb, mb, lb, rate=0.5, reduction=True))
    ref_bf = _vae_loss_ref(xb, nb, mb, lb, 0.5, True)
    assert jnp.allclose(loss_bf, ref_bf, rtol=1e-5, atol=1e-5), (loss_bf, ref_bf)

    # Forced small tiles: exercises the D-tiling path (2-D grid accumulation)
    # with ragged rows AND ragged feature blocks, at small shapes.
    B3, D3, Z3 = 20, 384, 40
    x_hat3 = jax.random.normal(k1, (B3, D3), dtype=jnp.float32)
    norm_x3 = jax.random.normal(k2, (B3, D3), dtype=jnp.float32)
    mean3 = jax.random.normal(k3, (B3, Z3), dtype=jnp.float32) * 0.5
    log_var3 = jax.random.normal(k4, (B3, Z3), dtype=jnp.float32) * 0.1
    loss3 = jax.block_until_ready(
        vae_loss(x_hat3, norm_x3, mean3, log_var3, rate=0.25, reduction=True,
                 tile_override=(8, 256)))
    ref3 = _vae_loss_ref(x_hat3, norm_x3, mean3, log_var3, 0.25, True)
    assert jnp.allclose(loss3, ref3, rtol=1e-5, atol=1e-5), (loss3, ref3)
    loss3_ns = jax.block_until_ready(
        vae_loss(x_hat3, norm_x3, mean3, log_var3, rate=0.25, reduction=False,
                 tile_override=(8, 256)))
    ref3_ns = _vae_loss_ref(x_hat3, norm_x3, mean3, log_var3, 0.25, False)
    assert loss3_ns.shape == (B3,)
    assert jnp.allclose(loss3_ns, ref3_ns, rtol=1e-5, atol=1e-5)

    print("KERNEL_OK")
</pallas_src>

<mosaic_0001>
module attributes {stable_mosaic.version = 11 : i64} {
  func.func @_vae_loss_kernel(%arg0: i32, %arg1: i32, %arg2: memref<1xf32, #tpu.memory_space<smem>>, %arg3: memref<8x128xf32, #tpu.memory_space<vmem>>, %arg4: memref<8x128xf32, #tpu.memory_space<vmem>>, %arg5: memref<8x32xf32, #tpu.memory_space<vmem>>, %arg6: memref<8x32xf32, #tpu.memory_space<vmem>>, %arg7: memref<8x1xf32, #tpu.memory_space<vmem>>, %arg8: memref<8x1xf32, #tpu.memory_space<vmem>>) attributes {dimension_semantics = [#tpu.dimension_semantics<parallel>, #tpu.dimension_semantics<arbitrary>], iteration_bounds = array<i64: 1, 1>, scalar_prefetch = 0 : i64, scratch_operands = 1 : i64, tpu.core_type = #tpu.core_type<tc>, window_params = [{transform_indices = @transform_0, window_bounds = array<i64: 1>}, {transform_indices = @transform_1, window_bounds = array<i64: 8, 128>}, {transform_indices = @transform_2, window_bounds = array<i64: 8, 128>}, {transform_indices = @transform_3, window_bounds = array<i64: 8, 32>}, {transform_indices = @transform_4, window_bounds = array<i64: 8, 32>}, {transform_indices = @transform_5, window_bounds = array<i64: 8, 1>}]} {
    %c0_i32 = arith.constant 0 : i32
    %0 = arith.cmpi eq, %arg1, %c0_i32 : i32
    %1 = arith.extui %0 : i1 to i32
    %c0_i32_0 = arith.constant 0 : i32
    %2 = arith.cmpi ne, %1, %c0_i32_0 : i32
    scf.if %2 {
      %c0_11 = arith.constant 0 : index
      %c0_12 = arith.constant 0 : index
      %17 = vector.load %arg5[%c0_11, %c0_12] : memref<8x32xf32, #tpu.memory_space<vmem>>, vector<8x32xf32>
      %c0_13 = arith.constant 0 : index
      %c0_14 = arith.constant 0 : index
      %18 = vector.load %arg6[%c0_13, %c0_14] : memref<8x32xf32, #tpu.memory_space<vmem>>, vector<8x32xf32>
      %19 = arith.mulf %17, %17 : vector<8x32xf32>
      %20 = math.exp %18 : vector<8x32xf32>
      %21 = arith.addf %19, %20 : vector<8x32xf32>
      %22 = arith.subf %21, %18 : vector<8x32xf32>
      %cst_15 = arith.constant 1.000000e+00 : f32
      %23 = vector.broadcast %cst_15 : f32 to vector<8x32xf32>
      %24 = arith.subf %22, %23 : vector<8x32xf32>
      %cst_16 = arith.constant dense<0.000000e+00> : vector<8xf32>
      %25 = vector.multi_reduction <add>, %24, %cst_16 [1] : vector<8x32xf32> to vector<8xf32>
      %26 = vector.shape_cast %25 : vector<8xf32> to vector<8x1xf32>
      %cst_17 = arith.constant 3.125000e-02 : f32
      %27 = vector.broadcast %cst_17 : f32 to vector<8x1xf32>
      %28 = arith.mulf %26, %27 : vector<8x1xf32>
      %c0_18 = arith.constant 0 : index
      %29 = memref.load %arg2[%c0_18] : memref<1xf32, #tpu.memory_space<smem>>
      %30 = vector.broadcast %29 : f32 to vector<8x1xf32>
      %31 = arith.mulf %30, %28 : vector<8x1xf32>
      %c0_19 = arith.constant 0 : index
      %c0_20 = arith.constant 0 : index
      %32 = vector.load %arg8[%c0_19, %c0_20] : memref<8x1xf32, #tpu.memory_space<vmem>>, vector<8x1xf32>
      tpu.vector_store %arg8[%c0_19, %c0_20], %31 {strides = array<i32>} : memref<8x1xf32, #tpu.memory_space<vmem>>, vector<8x1xf32>,
    } else {
    }
    %c0 = arith.constant 0 : index
    %c0_1 = arith.constant 0 : index
    %3 = vector.load %arg3[%c0, %c0_1] : memref<8x128xf32, #tpu.memory_space<vmem>>, vector<8x128xf32>
    %c0_2 = arith.constant 0 : index
    %c0_3 = arith.constant 0 : index
    %4 = vector.load %arg4[%c0_2, %c0_3] : memref<8x128xf32, #tpu.memory_space<vmem>>, vector<8x128xf32>
    %5 = arith.subf %3, %4 : vector<8x128xf32>
    %6 = arith.mulf %5, %5 : vector<8x128xf32>
    %c0_4 = arith.constant 0 : index
    %c0_5 = arith.constant 0 : index
    %7 = vector.load %arg8[%c0_4, %c0_5] : memref<8x1xf32, #tpu.memory_space<vmem>>, vector<8x1xf32>
    %cst = arith.constant dense<0.000000e+00> : vector<8xf32>
    %8 = vector.multi_reduction <add>, %6, %cst [1] : vector<8x128xf32> to vector<8xf32>
    %9 = vector.shape_cast %8 : vector<8xf32> to vector<8x1xf32>
    %cst_6 = arith.constant 7.812500e-03 : f32
    %10 = vector.broadcast %cst_6 : f32 to vector<8x1xf32>
    %11 = arith.mulf %9, %10 : vector<8x1xf32>
    %12 = arith.addf %7, %11 : vector<8x1xf32>
    %c0_7 = arith.constant 0 : index
    %c0_8 = arith.constant 0 : index
    %13 = vector.load %arg8[%c0_7, %c0_8] : memref<8x1xf32, #tpu.memory_space<vmem>>, vector<8x1xf32>
    tpu.vector_store %arg8[%c0_7, %c0_8], %12 {strides = array<i32>} : memref<8x1xf32, #tpu.memory_space<vmem>>, vector<8x1xf32>,
    %c0_i32_9 = arith.constant 0 : i32
    %14 = arith.cmpi eq, %arg1, %c0_i32_9 : i32
    %15 = arith.extui %14 : i1 to i32
    %c0_i32_10 = arith.constant 0 : i32
    %16 = arith.cmpi ne, %15, %c0_i32_10 : i32
    scf.if %16 {
      %c0_11 = arith.constant 0 : index
      %c0_12 = arith.constant 0 : index
      %17 = vector.load %arg8[%c0_11, %c0_12] : memref<8x1xf32, #tpu.memory_space<vmem>>, vector<8x1xf32>
      %c0_13 = arith.constant 0 : index
      %c0_14 = arith.constant 0 : index
      %18 = vector.load %arg7[%c0_13, %c0_14] : memref<8x1xf32, #tpu.memory_space<vmem>>, vector<8x1xf32>
      tpu.vector_store %arg7[%c0_13, %c0_14], %17 {strides = array<i32>} : memref<8x1xf32, #tpu.memory_space<vmem>>, vector<8x1xf32>,
    } else {
    }
    return
  }
  func.func @transform_0(%arg0: i32, %arg1: i32) -> i32 {
    %c0_i32 = arith.constant 0 : i32
    %c0_i32_0 = arith.constant 0 : i32
    return %c0_i32 : i32
  }
  func.func @transform_1(%arg0: i32, %arg1: i32) -> (i32, i32) {
    %c0_i32 = arith.constant 0 : i32
    return %arg0, %arg1 : i32, i32
  }
  func.func @transform_2(%arg0: i32, %arg1: i32) -> (i32, i32) {
    %c0_i32 = arith.constant 0 : i32
    return %arg0, %arg1 : i32, i32
  }
  func.func @transform_3(%arg0: i32, %arg1: i32) -> (i32, i32) {
    %c0_i32 = arith.constant 0 : i32
    %c0_i32_0 = arith.constant 0 : i32
    return %arg0, %c0_i32 : i32, i32
  }
  func.func @transform_4(%arg0: i32, %arg1: i32) -> (i32, i32) {
    %c0_i32 = arith.constant 0 : i32
    %c0_i32_0 = arith.constant 0 : i32
    return %arg0, %c0_i32 : i32, i32
  }
  func.func @transform_5(%arg0: i32, %arg1: i32) -> (i32, i32) {
    %c0_i32 = arith.constant 0 : i32
    %c0_i32_0 = arith.constant 0 : i32
    return %arg0, %c0_i32 : i32, i32
  }
}

</mosaic_0001>

<bundles_post_ra>
// kernel: tpu_custom_call.1
= control target key start
LH: loop header
LB: loop body
LE: loop exit
PB: predicated region body
PF: predicated region fallthrough
CT: control target
= control target key end

     0   :  { %11 = vsyncpa [#allocation5], 0  ;;  %s254_s0 = inlined_call_operand.<no memory space> [shape: f32[1], index: 0, kind: input, shape index: {}]   ;;  %s255_s1 = inlined_call_operand.hbm [shape: f32[8,128], index: 1, kind: input, shape index: {}]   ;;  %s256_s2 = inlined_call_operand.hbm [shape: f32[8,128], index: 2, kind: input, shape index: {}]   ;;  %s257_s3 = inlined_call_operand.vmem [shape: f32[8,32], index: 3, kind: input, shape index: {}]   ;;  %s258_s4 = inlined_call_operand.hbm [shape: f32[8,32], index: 4, kind: input, shape index: {}]   ;;  %s259_s5 = inlined_call_operand.vmem [shape: f32[8,1], index: 5, kind: output, shape index: {}]  }
   0x1   :  { %12 = vsyncpa [#allocation7], 0  ;;  %s176_s18 = smov [#allocation6]   ;;  %s177_s20 = smov [#allocation4]  }
   0x2   :  { %s31_s19 = sshll.u32 %s176_s18, 4  ;;  %s21_s21 = sshll.u32 %s177_s20, 4  ;;  %s32_s19 = int_to_ptr.vmem [resolvable:$true] %s31_s19  ;;  %s22_s21 = int_to_ptr.vmem [resolvable:$true] %s21_s21 }
   0x3   :  { %s106_s24 = scalar_lea.hbm %s256_s2, 128 }
   0x4   :  { %p107_p0 = scmp.ne.s32.totalorder %s256_s2, %s106_s24  ;;  %p110_p1 = scmp.lt.u32.totalorder %s106_s24, %s256_s2 }
   0x6   :  { %p112_p2 = pnand %p110_p1, %p107_p0 }
   0x8   :  { %115 = shalt.err (!%p112_p2)
}
   0x9   :  { %s116_s29 = scalar_lea.vmem %s32_s19, 128  ;;  %p121_p4 = scmp.lt.s32.totalorder %s32_s19, %s32_s19 }
   0xa   :  { %p117_p3 = scmp.ne.s32.totalorder %s32_s19, %s116_s29  ;;  %p122_p5 = scmp.lt.s32.totalorder %s116_s29, %s116_s29 }
   0xc   :  { %p123_p6 = por %p122_p5, %p121_p4 }
   0xe   :  { %p124_p7 = pnand %p123_p6, %p117_p3 }
  0x10   :  { %127 = shalt.err (!%p124_p7)
}
  0x11   :  { %34 = dma.hbm_to_vmem [thread:$0]  %s256_s2, 128, %s32_s19, [#allocation7]  }
  0x12   :  { %s128_s9 = scalar_lea.hbm %s255_s1, 128 }
  0x13   :  { %p129_p8 = scmp.ne.s32.totalorder %s255_s1, %s128_s9  ;;  %p132_p9 = scmp.lt.u32.totalorder %s128_s9, %s255_s1 }
  0x15   :  { %p134_p10 = pnand %p132_p9, %p129_p8 }
  0x17   :  { %137 = shalt.err (!%p134_p10)
}
  0x18   :  { %s138_s14 = scalar_lea.vmem %s22_s21, 128  ;;  %p143_p12 = scmp.lt.s32.totalorder %s22_s21, %s22_s21 }
  0x19   :  { %p139_p11 = scmp.ne.s32.totalorder %s22_s21, %s138_s14  ;;  %p144_p13 = scmp.lt.s32.totalorder %s138_s14, %s138_s14 }
  0x1b   :  { %p145_p0 = por %p144_p13, %p143_p12 }
  0x1d   :  { %p146_p1 = pnand %p145_p0, %p139_p11 }
  0x1f   :  { %149 = shalt.err (!%p146_p1)
}
  0x20   :  { %24 = dma.hbm_to_vmem [thread:$0]  %s255_s1, 128, %s22_s21, [#allocation5]  }
  0x21   :  { %s178_s16 = smov [#allocation8]   ;;  %s150_s20 = scalar_lea.hbm %s258_s4, 128 }
  0x22   :  { %s43_s17 = sshll.u32 %s178_s16, 4  ;;  %p151_p2 = scmp.ne.s32.totalorder %s258_s4, %s150_s20  ;;  %s44_s17 = int_to_ptr.vmem [resolvable:$true] %s43_s17 }
  0x23   :  { %p154_p3 = scmp.lt.u32.totalorder %s150_s20, %s258_s4 }
  0x25   :  { %p156_p4 = pnand %p154_p3, %p151_p2 }
  0x27   :  { %159 = shalt.err (!%p156_p4)
}
  0x28   :  { %s160_s26 = scalar_lea.vmem %s44_s17, 128  ;;  %p165_p6 = scmp.lt.s32.totalorder %s44_s17, %s44_s17 }
  0x29   :  { %p161_p5 = scmp.ne.s32.totalorder %s44_s17, %s160_s26  ;;  %p166_p7 = scmp.lt.s32.totalorder %s160_s26, %s160_s26 }
  0x2b   :  { %p167_p8 = por %p166_p7, %p165_p6 }
  0x2d   :  { %p168_p9 = pnand %p167_p8, %p161_p5 }
  0x2f   :  { %171 = shalt.err (!%p168_p9)
}
  0x30   :  { %46 = dma.hbm_to_vmem [thread:$0]  %s258_s4, 128, %s44_s17, [#allocation7]  }
  0x31   :  { %172 = dma.done.wait [#allocation5], 128  }
  0x32   :  { %173 = vsyncadd [#allocation5], 4294967168 }
  0x33   :  { %174 = dma.done.wait [#allocation7], 256  }
  0x34   :  { %175 = vsyncadd [#allocation7], 4294967040  ;;  %v61_v0 = vld [vmem:[#allocation8] sm:$0xff]  ;;  %v60_v2 = vld [vmem:[%s257_s3] sm:$0xff]  ;;  %vm68_vm0 = vcmask 261120   ;;  %v74_v13 = vstv %s254_s0  ;;  %vm76_vm1 = vcmask 7168  }
  0x35   :  { %v63_v1 = vmul.f32 1.442695, %v61_v0  ;;  %v62_v3 = vmul.f32 %v60_v2, %v60_v2  ;;  %v78_v6 = vld [vmem:[#allocation4] sm:$0xff]  ;;  %v79_v7 = vld [vmem:[#allocation6] sm:$0xff] }
  0x36   :  { %v80_v9 = vsub.f32 %v78_v6, %v79_v7 }
  0x37   :  { %104 = vpow2.f32 %v63_v1 }
  0x38   :  { %v81_v12 = vmul.f32 %v80_v9, %v80_v9 }
  0x41   :  { %v105_v4 = vpop.eup %104 }
  0x42   :  { %v65_v5 = vadd.f32 %v105_v4, %v62_v3 }
  0x44   :  { %v66_v8 = vsub.f32 %v65_v5, %v61_v0 }
  0x46   :  { %v100_v10 = vadd.f32 -1.0, %v66_v8 }
  0x48   :  { %v69_v11 = vsel %vm68_vm0, %v100_v10, 0.0 }
  0x49   :  { %70 = vadd.xlane.f32.xlu0 %v69_v11 }
  0x4d   :  { %83 = vadd.xlane.f32.xlu0 %v81_v12 }
  0xd6   :  { %v71_v14 = vpop.xlane.xlu0 %70 }
  0xd7   :  { %v72_v15 = vmul.f32 0.03125, %v71_v14 }
  0xd9   :  { %v75_v16 = vmul.f32 %v74_v13, %v72_v15 }
  0xda   :  { %v84_v17 = vpop.xlane.xlu0 %83 }
  0xdb   :  { %77 = vst.msk [vmem:[#allocation2] sm:$0xff] %vm76_vm1, %v75_v16  ;;  %v85_v18 = vmul.f32 0.0078125, %v84_v17 }
  0xe2   :  { %v82_v19 = vld [vmem:[#allocation2] sm:$0xff] }
  0xe3   :  { %v86_v20 = vadd.f32 %v85_v18, %v82_v19 }
  0xe5   :  { %88 = vst.msk [vmem:[#allocation2] sm:$0xff] %vm76_vm1, %v86_v20 }
  0xec   :  { %v92_v21 = vld [vmem:[#allocation2] sm:$0xff] }
  0xed   :  { %93 = vst.msk [vmem:[%s259_s5] sm:$0xff] %vm76_vm1, %v92_v21 }
  0xee   :  { %98 = vsyncpa [#allocation5], 1 }
  0xef   :  { %99 = vsyncpa [#allocation7], 1 }

</bundles_post_ra>
